<compile_context>
chip_gen: v7x
topology: tpu7x:2x2x1
jax: 0.10.0
libtpu: 0.0.40
codegen_flags: <defaults>
</compile_context>

<pallas_src>
import functools
import math

import jax
import jax.numpy as jnp
from jax import lax
from jax.experimental import pallas as pl
from jax.experimental.pallas import tpu as pltpu

D_MODEL = 128      # small stand-in for 512 (lane dim stays a multiple of 128)
DROPOUT_P = 0.2
MAX_LEN = 16       # small stand-in for 60
BATCH = 2
SEQ = 8


def _build_pe(max_len: int, d_model: int) -> jnp.ndarray:
    """Sinusoidal positional-encoding buffer, same formula as the PyTorch init."""
    position = jnp.arange(max_len, dtype=jnp.float32)[:, None]            # (L, 1)
    div_term = jnp.exp(
        jnp.arange(0, d_model, 2, dtype=jnp.float32) * -(math.log(10000.0) / d_model)
    )                                                                      # (D/2,)
    pe = jnp.zeros((max_len, d_model), dtype=jnp.float32)
    pe = pe.at[:, 0::2].set(jnp.sin(position * div_term))
    pe = pe.at[:, 1::2].set(jnp.cos(position * div_term))
    return pe[None]                                                        # (1, L, D)


def _vmem_capacity_bytes() -> int:
    """Physical VMEM per core; conservative fallback when not on a TPU (tests/interpret)."""
    try:
        return int(pltpu.get_tpu_info().vmem_capacity_bytes)
    except Exception:
        return 64 << 20          # v7x per-TC value: safe lower bound everywhere


def _vmem_limit_bytes() -> int:
    # 3/4 of physical: 96 MiB on v5e/v6e (128 MiB), 48 MiB on v7x (64 MiB).
    return (_vmem_capacity_bytes() * 3) // 4


def _choose_batch_tile(B: int, L: int, D: int, itemsize: int) -> int:
    """Rows of the batch per grid step.

    Target ~cap/10 bytes per x block so 2x(x) + 2x(out) double-buffered blocks (+ tiny
    pe) stay well under the scoped-VMEM limit on every generation.  Cap at ceil(B/2)
    so there are always >=2 grid steps (v7x: both TensorCores), then round down to a
    divisor of B so the last block is full (unmasked, lane/sublane-dense stores).
    """
    target_block_bytes = max(1 << 20, _vmem_capacity_bytes() // 10)
    rows = max(1, target_block_bytes // (L * D * itemsize))
    rows = min(rows, B)
    if B >= 2:
        rows = min(rows, (B + 1) // 2)
    while B % rows != 0:
        rows -= 1
    return rows


def _mix_u32(idx_u32, seed_u32):
    """SplitMix32-style stateless mixer: pure u32 VPU ops, no TPU PRNG state."""
    z = idx_u32 + seed_u32 * jnp.uint32(0x9E3779B9)
    z = (z ^ (z >> 16)) * jnp.uint32(0x7FEB352D)
    z = (z ^ (z >> 15)) * jnp.uint32(0x846CA68B)
    return z ^ (z >> 16)


def _pe_add_kernel(x_ref, pe_ref, o_ref):
    # Inference fast path: just x + pe (pe broadcast over the TB batch rows).
    o_ref[...] = (x_ref[...].astype(jnp.float32) + pe_ref[...]).astype(o_ref.dtype)


def _pe_dropout_kernel(seed_ref, x_ref, pe_ref, o_ref, *, drop_threshold, keep_scale):
    # seed_ref : SMEM scalar-prefetch (int32[1])
    # x_ref/o_ref : (TB, L, D) VMEM tiles; pe_ref : (1, L, D) shared VMEM tile.
    i = pl.program_id(0)
    tb, l, d = x_ref.shape

    y = x_ref[...].astype(jnp.float32) + pe_ref[...]

    # Stateless counter-based PRNG: hash of (seed, global element index).
    # Mask is independent of the tiling (TB / grid order), unlike the stateful PRNG.
    b_idx = lax.broadcasted_iota(jnp.int32, (tb, l, d), 0)
    l_idx = lax.broadcasted_iota(jnp.int32, (tb, l, d), 1)
    d_idx = lax.broadcasted_iota(jnp.int32, (tb, l, d), 2)
    gid = ((i * tb + b_idx) * l + l_idx) * d + d_idx        # int32, wrap ok (hash input)
    bits = _mix_u32(gid.astype(jnp.uint32), seed_ref[0].astype(jnp.uint32))

    # Inverted dropout via integer threshold: keep iff bits >= round(p * 2^32).
    keep = bits >= jnp.uint32(drop_threshold)
    mask = jnp.where(keep, jnp.float32(keep_scale), jnp.float32(0.0))
    o_ref[...] = (y * mask).astype(o_ref.dtype)


def positional_encoding_forward(x: jnp.ndarray, pe: jnp.ndarray, *,
                                dropout_p: float = DROPOUT_P,
                                seed: int = 0,
                                train: bool = True) -> jnp.ndarray:
    """x: (B, L, D); pe: (1, max_len, D) f32. Returns dropout(x + pe[:, :L])."""
    B, L, D = x.shape
    pe_slice = pe[:, :L, :].astype(jnp.float32)              # (1, L, D)
    itemsize = jnp.dtype(x.dtype).itemsize

    TB = _choose_batch_tile(B, L, D, itemsize)
    grid = (B // TB,)

    # Mem-bound elementwise op: x read + out write (+ tiny pe read), ~a dozen VPU ops/elem.
    cost = pl.CostEstimate(
        flops=12 * B * L * D,
        transcendentals=0,
        bytes_accessed=2 * B * L * D * itemsize + L * D * 4,
    )
    cparams = pltpu.CompilerParams(
        # Every grid step is independent (stateless hash PRNG) -> parallel.
        # On v7x, pltpu.CORE_PARALLEL here shards the >=2-step grid across both TCs.
        dimension_semantics=("parallel",),
        vmem_limit_bytes=_vmem_limit_bytes(),
    )

    if (not train) or dropout_p == 0.0:
        return pl.pallas_call(
            _pe_add_kernel,
            out_shape=jax.ShapeDtypeStruct((B, L, D), x.dtype),
            grid_spec=pltpu.PrefetchScalarGridSpec(
                num_scalar_prefetch=0,
                grid=grid,
                in_specs=[
                    pl.BlockSpec((TB, L, D), lambda i: (i, 0, 0)),   # x batch-chunk
                    pl.BlockSpec((1, L, D), lambda i: (0, 0, 0)),    # shared pe tile
                ],
                out_specs=pl.BlockSpec((TB, L, D), lambda i: (i, 0, 0)),
            ),
            compiler_params=cparams,
            cost_estimate=cost,
        )(x, pe_slice)

    drop_threshold = int(round(dropout_p * float(1 << 32)))
    keep_scale = 1.0 / (1.0 - dropout_p)
    kernel = functools.partial(_pe_dropout_kernel,
                               drop_threshold=drop_threshold,
                               keep_scale=keep_scale)
    seed_arr = jnp.array([seed], dtype=jnp.int32)

    return pl.pallas_call(
        kernel,
        out_shape=jax.ShapeDtypeStruct((B, L, D), x.dtype),
        grid_spec=pltpu.PrefetchScalarGridSpec(
            num_scalar_prefetch=1,
            grid=grid,
            in_specs=[
                pl.BlockSpec((TB, L, D), lambda i, seed: (i, 0, 0)),  # x batch-chunk
                pl.BlockSpec((1, L, D), lambda i, seed: (0, 0, 0)),   # shared pe tile
            ],
            out_specs=pl.BlockSpec((TB, L, D), lambda i, seed: (i, 0, 0)),
        ),
        compiler_params=cparams,
        cost_estimate=cost,
    )(seed_arr, x, pe_slice)


if __name__ == "__main__":
    key = jax.random.PRNGKey(0)
    x = jax.random.normal(key, (BATCH, SEQ, D_MODEL), dtype=jnp.float32)
    pe = _build_pe(MAX_LEN, D_MODEL)
    ref = x + pe[:, :SEQ, :]

    # Training path (dropout active).
    out = jax.block_until_ready(positional_encoding_forward(x, pe, dropout_p=DROPOUT_P,
                                                            seed=0, train=True))
    assert out.shape == x.shape and out.dtype == x.dtype
    keep_scale = 1.0 / (1.0 - DROPOUT_P)
    kept = out != 0.0   # (elements where x+pe is exactly 0 would be misclassified; test-only)
    assert jnp.allclose(out[kept], (ref * keep_scale)[kept], atol=1e-5)
    keep_frac = float(jnp.mean(kept.astype(jnp.float32)))
    assert 0.6 < keep_frac < 0.95

    # Inference fast path (no dropout).
    out_eval = jax.block_until_ready(positional_encoding_forward(x, pe, train=False))
    assert jnp.allclose(out_eval, ref, atol=1e-6)

    print("KERNEL_OK")
</pallas_src>

<mosaic_0001>
module attributes {stable_mosaic.version = 11 : i64} {
  func.func @_pe_dropout_kernel(%arg0: i32, %arg1: memref<1xi32, #tpu.memory_space<smem>>, %arg2: memref<1x8x128xf32, #tpu.memory_space<vmem>>, %arg3: memref<1x8x128xf32, #tpu.memory_space<vmem>>, %arg4: memref<1x8x128xf32, #tpu.memory_space<vmem>>) attributes {dimension_semantics = [#tpu.dimension_semantics<parallel>], iteration_bounds = array<i64: 2>, scalar_prefetch = 1 : i64, scratch_operands = 0 : i64, tpu.core_type = #tpu.core_type<tc>, window_params = [{transform_indices = @transform_0, window_bounds = array<i64: 1, 8, 128>}, {pipeline_mode = #tpu.pipeline_mode<synchronous>, transform_indices = @transform_1, window_bounds = array<i64: 1, 8, 128>}, {transform_indices = @transform_2, window_bounds = array<i64: 1, 8, 128>}]} {
    %c0 = arith.constant 0 : index
    %c0_0 = arith.constant 0 : index
    %c0_1 = arith.constant 0 : index
    %0 = vector.load %arg2[%c0, %c0_0, %c0_1] : memref<1x8x128xf32, #tpu.memory_space<vmem>>, vector<1x8x128xf32>
    %c0_2 = arith.constant 0 : index
    %c0_3 = arith.constant 0 : index
    %c0_4 = arith.constant 0 : index
    %1 = vector.load %arg3[%c0_2, %c0_3, %c0_4] : memref<1x8x128xf32, #tpu.memory_space<vmem>>, vector<1x8x128xf32>
    %2 = arith.addf %0, %1 : vector<1x8x128xf32>
    %3 = tpu.iota {dimensions = array<i32: 0>} : vector<1x8x128xi32>
    %4 = tpu.iota {dimensions = array<i32: 1>} : vector<1x8x128xi32>
    %5 = tpu.iota {dimensions = array<i32: 2>} : vector<1x8x128xi32>
    %c1_i32 = arith.constant 1 : i32
    %6 = arith.muli %arg0, %c1_i32 : i32
    %7 = vector.broadcast %6 : i32 to vector<1x8x128xi32>
    %8 = arith.addi %7, %3 : vector<1x8x128xi32>
    %c8_i32 = arith.constant 8 : i32
    %9 = vector.broadcast %c8_i32 : i32 to vector<1x8x128xi32>
    %10 = arith.muli %8, %9 : vector<1x8x128xi32>
    %11 = arith.addi %10, %4 : vector<1x8x128xi32>
    %c128_i32 = arith.constant 128 : i32
    %12 = vector.broadcast %c128_i32 : i32 to vector<1x8x128xi32>
    %13 = arith.muli %11, %12 : vector<1x8x128xi32>
    %14 = arith.addi %13, %5 : vector<1x8x128xi32>
    %c0_5 = arith.constant 0 : index
    %15 = memref.load %arg1[%c0_5] : memref<1xi32, #tpu.memory_space<smem>>
    %c-1640531527_i32 = arith.constant -1640531527 : i32
    %16 = arith.muli %15, %c-1640531527_i32 : i32
    %17 = vector.broadcast %16 : i32 to vector<1x8x128xi32>
    %18 = arith.addi %14, %17 : vector<1x8x128xi32>
    %c16_i32 = arith.constant 16 : i32
    %19 = vector.broadcast %c16_i32 : i32 to vector<1x8x128xi32>
    %20 = arith.shrui %18, %19 : vector<1x8x128xi32>
    %21 = arith.xori %18, %20 : vector<1x8x128xi32>
    %c2146121005_i32 = arith.constant 2146121005 : i32
    %22 = vector.broadcast %c2146121005_i32 : i32 to vector<1x8x128xi32>
    %23 = arith.muli %21, %22 : vector<1x8x128xi32>
    %c15_i32 = arith.constant 15 : i32
    %24 = vector.broadcast %c15_i32 : i32 to vector<1x8x128xi32>
    %25 = arith.shrui %23, %24 : vector<1x8x128xi32>
    %26 = arith.xori %23, %25 : vector<1x8x128xi32>
    %c-2073254261_i32 = arith.constant -2073254261 : i32
    %27 = vector.broadcast %c-2073254261_i32 : i32 to vector<1x8x128xi32>
    %28 = arith.muli %26, %27 : vector<1x8x128xi32>
    %c16_i32_6 = arith.constant 16 : i32
    %29 = vector.broadcast %c16_i32_6 : i32 to vector<1x8x128xi32>
    %30 = arith.shrui %28, %29 : vector<1x8x128xi32>
    %31 = arith.xori %28, %30 : vector<1x8x128xi32>
    %c858993459_i32 = arith.constant 858993459 : i32
    %32 = vector.broadcast %c858993459_i32 : i32 to vector<1x8x128xi32>
    %33 = arith.cmpi uge, %31, %32 : vector<1x8x128xi32>
    %cst = arith.constant 1.250000e+00 : f32
    %cst_7 = arith.constant 0.000000e+00 : f32
    %34 = vector.broadcast %cst : f32 to vector<1x8x128xf32>
    %35 = vector.broadcast %cst_7 : f32 to vector<1x8x128xf32>
    %36 = arith.select %33, %34, %35 : vector<1x8x128xi1>, vector<1x8x128xf32>
    %37 = arith.mulf %2, %36 : vector<1x8x128xf32>
    %c0_8 = arith.constant 0 : index
    %c0_9 = arith.constant 0 : index
    %c0_10 = arith.constant 0 : index
    %38 = vector.load %arg4[%c0_8, %c0_9, %c0_10] : memref<1x8x128xf32, #tpu.memory_space<vmem>>, vector<1x8x128xf32>
    tpu.vector_store %arg4[%c0_8, %c0_9, %c0_10], %37 {strides = array<i32>} : memref<1x8x128xf32, #tpu.memory_space<vmem>>, vector<1x8x128xf32>,
    return
  }
  func.func @transform_0(%arg0: i32, %arg1: memref<1xi32, #tpu.memory_space<smem>>) -> (i32, i32, i32) {
    %c0_i32 = arith.constant 0 : i32
    %c0_i32_0 = arith.constant 0 : i32
    %c0_i32_1 = arith.constant 0 : i32
    return %arg0, %c0_i32, %c0_i32_0 : i32, i32, i32
  }
  func.func @transform_1(%arg0: i32, %arg1: memref<1xi32, #tpu.memory_space<smem>>) -> (i32, i32, i32) {
    %c0_i32 = arith.constant 0 : i32
    %c0_i32_0 = arith.constant 0 : i32
    %c0_i32_1 = arith.constant 0 : i32
    %c0_i32_2 = arith.constant 0 : i32
    return %c0_i32, %c0_i32_0, %c0_i32_1 : i32, i32, i32
  }
  func.func @transform_2(%arg0: i32, %arg1: memref<1xi32, #tpu.memory_space<smem>>) -> (i32, i32, i32) {
    %c0_i32 = arith.constant 0 : i32
    %c0_i32_0 = arith.constant 0 : i32
    %c0_i32_1 = arith.constant 0 : i32
    return %arg0, %c0_i32, %c0_i32_0 : i32, i32, i32
  }
}

</mosaic_0001>

<bundles_post_ra>
// kernel: tpu_custom_call.1
= control target key start
LH: loop header
LB: loop body
LE: loop exit
PB: predicated region body
PF: predicated region fallthrough
CT: control target
= control target key end

     0   :  { %s727_s0 = inlined_call_operand.<no memory space> [shape: s32[1], index: 0, kind: input, shape index: {}]   ;;  %s728_s1 = inlined_call_operand.hbm [shape: f32[2,8,128], index: 1, kind: input, shape index: {}]   ;;  %s729_s2 = inlined_call_operand.hbm [shape: f32[1,8,128], index: 2, kind: input, shape index: {}]   ;;  %s730_s3 = inlined_call_operand.hbm [shape: f32[2,8,128], index: 3, kind: output, shape index: {}]  }
   0x1   :  { %8 = sst [smem:[#allocation3]] %s727_s0 }
   0x2   :  { %9 = vsyncpa [#allocation5], 0 }
   0x3   :  { %11 = vsyncpa [#allocation5 + $0x1], 0 }
   0x4   :  { %12 = vsyncpa [#allocation8], 0 }
   0x5   :  { %13 = vsyncpa [#allocation6], 0 }
   0x6   :  { %15 = vsyncpa [#allocation6 + $0x1], 0  ;;  %s525_s14 = smov 0   ;;  %s527_s15 = smov 0  }
   0x7   :  { %s529_s16 = smov 0   ;;  %s531_s17 = smov 0  }
   0x8 LB: > { %s546_s0 = sadd.s32 4294967295, %s496_s17   ;;  %s296_s18 = sadd.s32 4294967294, %s496_s17   ;;  %s496_s17 = sphi %s531_s17, %s754_s17   ;;  %s492_s16 = sphi %s529_s16, %s753_s16   ;;  %s488_s15 = sphi %s527_s15, %s752_s15   ;;  %s484_s14 = sphi %s525_s14, %s751_s14  }
   0x9   : > { %p41_p0 = scmp.ne.s32.totalorder %s488_s15, %s484_s14  ;;  %p731_p1 = scmp.eq.s32.totalorder %s546_s0, 0 }
   0xa   : > { %p92_p3 = scmp.eq.s32.totalorder %s296_s18, 1  ;;  %p297_p5 = scmp.ge.s32.totalorder %s496_s17, 1 }
   0xb   : > { %p555_p4 = por %p731_p1, %p41_p0  ;;  %p99_p7 = scmp.lt.s32.totalorder %s496_s17, 3 }
   0xc   : > { %p560_p6 = por %p92_p3, %p41_p0  ;;  %s498_s22 = smov [#allocation7]  }
   0xd   : > { %s734_s19 = scalar_select %p555_p4, 1, 0 }
   0xe   : > { %s735_s20 = scalar_select %p560_p6, 1, 0 }
   0xf   : > { %p565_p8 = pnand %p297_p5, %p99_p7  ;;  %s112_s23 = sshll.u32 %s498_s22, 4  ;;  %s113_s23 = int_to_ptr.vmem [resolvable:$true] %s112_s23 }
  0x10   : > { %s573_s24 = sadd.s32 1, %s496_s17   ;;  %s28_s28 = sadd.s32 1, %s492_s16 }
  0x11   : > { %s736_s21 = scalar_select %p565_p8, 1, 0 }
  0x12   : > { %p318_p10 = pneg %p565_p8  ;;  %s25_s26 = ssub.s32 %s496_s17, %s573_s24 }
  0x13   : > { %p583_p12 = scmp.eq.s32.totalorder %s25_s26, 0  ;;  %s368_s4 = scalar_lea.hbm %s729_s2, 128 }
  0x14   : > { %p577_p11 = pnand %p318_p10, %p731_p1  ;;  %p369_p0 = scmp.ne.s32.totalorder %s729_s2, %s368_s4 }
  0x15   : > { %s738_s27 = scalar_select %p583_p12, 1, 0 }
  0x16   : > { %p370_p3 = pneg %p577_p11  ;;  %p375_p10 = scmp.lt.u32.totalorder %s368_s4, %s729_s2 }
  0x18   : > { %p371_p5 = pnand %p370_p3, %p369_p0 }
  0x1a   : > { %p372_p7 = pneg %p371_p5 }
  0x1c   : > { %p377_p9 = pnand %p375_p10, %p372_p7 }
  0x1e   : > { %380 = shalt.err (!%p377_p9)
}
  0x1f   : > { %s381_s9 = scalar_lea.vmem %s113_s23, 128  ;;  %p389_p6 = scmp.lt.s32.totalorder %s113_s23, %s113_s23 }
  0x20   : > { %p382_p1 = scmp.ne.s32.totalorder %s113_s23, %s381_s9  ;;  %p390_p4 = scmp.lt.s32.totalorder %s381_s9, %s381_s9 }
  0x22   : > { %p384_p2 = pnand %p382_p1, %p370_p3  ;;  %p391_p8 = por %p390_p4, %p389_p6 }
  0x24   : > { %p385_p13 = pneg %p384_p2 }
  0x26   : > { %p392_p12 = pnand %p391_p8, %p385_p13 }
  0x28   : > { %395 = shalt.err (!%p392_p12)
}
  0x29   : > { %321 = dma.hbm_to_vmem [thread:$0]  (!%p577_p11), %s729_s2, 128, %s113_s23, [#allocation8]  }
  0x2a   : > { %p739_p1 = scmp.ne.s32.totalorder %s738_s27, 0  ;;  %p36_p2 = scmp.eq.s32.totalorder %s496_s17, 0 }
  0x2b   : > { %p740_p4 = scmp.ne.s32.totalorder %s492_s16, %s488_s15  ;;  %p741_p6 = scmp.eq.s32.totalorder %s546_s0, 1 }
  0x2c   : > { %s609_s12 = scalar_select %p739_p1, %s492_s16, %s28_s28  }
  0x2d   : > { %p617_p8 = por %p741_p6, %p740_p4  ;;  %p331_p9 = scmp.lt.s32.totalorder %s496_s17, 2 }
  0x2e   : > { %s123_s18 = sand.u32 1, %s492_s16   ;;  %p743_p12 = pmov %p740_p4 }
  0x2f   : > { %s300_s22 = sshll.u32 %s123_s18, 3  ;;  %s301_s25 = sshll.u32 %s496_s17, 7 }
  0x30   : > { %p37_p13 = por %p36_p2, %p743_p12  ;;  %s630_s23 = scalar_lea.hbm %s728_s1, %s301_s25 }
  0x31   : > { %s127_s27 = scalar_lea.vmem [#allocation4], %s300_s22  ;;  %s124_s4 = scalar_lea.sflag [#allocation5], %s123_s18 }
  0x32   : > { %s134_s28 = sshll.u32 %s127_s27, 4  ;;  %p632_p11 = pnand %p331_p9, %p37_p13  ;;  %s636_s28 = int_to_ptr.vmem [resolvable:$true] %s134_s28 }
  0x33   : > { %s396_s5 = scalar_lea.hbm %s630_s23, 128  ;;  %s401_s8 = scalar_lea.hbm %s728_s1, 256 }
  0x34   : > { %p397_p0 = scmp.ne.s32.totalorder %s630_s23, %s396_s5  ;;  %p398_p3 = pneg %p632_p11 }
  0x35   : > { %p402_p10 = scmp.lt.u32.totalorder %s630_s23, %s728_s1  ;;  %p403_p1 = scmp.lt.u32.totalorder %s401_s8, %s396_s5 }
  0x36   : > { %p399_p5 = pnand %p398_p3, %p397_p0  ;;  %p405_p4 = scmp.lt.u32.totalorder %s396_s5, %s630_s23 }
  0x37   : > { %p404_p2 = por %p403_p1, %p402_p10 }
  0x38   : > { %p400_p7 = pneg %p399_p5 }
  0x39   : > { %p406_p6 = por %p405_p4, %p404_p2 }
  0x3b   : > { %p407_p9 = pnand %p406_p6, %p400_p7 }
  0x3d   : > { %410 = shalt.err (!%p407_p9)
}
  0x3e   : > { %s411_s11 = scalar_lea.vmem %s636_s28, 128  ;;  %s499_s18 = smov [#allocation4]  }
  0x3f   : > { %p412_p12 = scmp.ne.s32.totalorder %s636_s28, %s411_s11  ;;  %s416_s22 = sshll.u32 %s499_s18, 4  ;;  %s417_s22 = int_to_ptr.vmem [resolvable:$false] %s416_s22 }
  0x40   : > { %s418_s25 = scalar_lea.vmem %s417_s22, 256  ;;  %p419_p5 = scmp.lt.s32.totalorder %s636_s28, %s417_s22 }
  0x41   : > { %p414_p13 = pnand %p412_p12, %p398_p3  ;;  %p420_p10 = scmp.lt.s32.totalorder %s418_s25, %s411_s11 }
  0x43   : > { %p415_p0 = pneg %p414_p13  ;;  %p421_p1 = por %p420_p10, %p419_p5 }
  0x45   : > { %p422_p2 = pnand %p421_p1, %p415_p0 }
  0x47   : > { %425 = shalt.err (!%p422_p2)
}
  0x48   : > { %325 = dma.hbm_to_vmem [thread:$0]  (!%p632_p11), %s630_s23, 128, %s636_s28, %s124_s4  }
  0x49   : > { %p745_p7 = scmp.ne.s32.totalorder %s736_s21, 0 }
  0x4a   : > { %s666_s26 = sand.u32 (!%p745_p7), 1, %s488_s15   ;;  %p746_p3 = scmp.ne.s32.totalorder (!%p745_p7), %s734_s19, 0 }
  0x4b   : > { %143 = sbr.rel (%p745_p7) target bundleno = 132 (0x84), region = 28  ;;  %s303_s29 = sshll.u32 (!%p745_p7), %s666_s26, 3 }
  0x4c   : > { %s146_s27 = scalar_lea.sflag (!%p745_p7), [#allocation5], %s666_s26  ;;  %s149_s5 = scalar_lea.vmem (!%p745_p7), [#allocation4], %s303_s29 }
  0x52   : > { %471 = dma.done.wait (%p746_p3), %s146_s27, 128  }
  0x53   : > { %473 = vsyncadd (%p746_p3), %s146_s27, 4294967168  ;;  %p747_p4 = scmp.eq.s32.totalorder %s546_s0, 0 }
  0x55   : > { %475 = dma.done.wait (%p747_p4), [#allocation8], 128   ;;  %p748_p11 = pmov %p747_p4 }
  0x56   : > { %v177_v0 = vlaneseq  ;;  %v181_v1 = vstv %s546_s0  ;;  %s186_s21 = sld [smem:[#allocation3]]  ;;  %v174_v16 = vld [vmem:[%s149_s5] sm:$0xff]  ;;  %v175_v17 = vld [vmem:[#allocation7] sm:$0xff]  ;;  %s173_s19 = scalar_lea.vmem [#allocation9], %s303_s29  ;;  %v500_v21 = vmov 0.0  }
  0x57   : > { %477 = vsyncadd (%p748_p11), [#allocation8], 4294967168  ;;  %v182_v2 = vmul.u32 8, %v181_v1  ;;  %v176_v19 = vadd.f32 %v175_v17, %v174_v16  ;;  %s216_s28 = sshll.u32 %s173_s19, 4  ;;  %s307_s30 = sshll.u32 %s546_s0, 7  ;;  %s680_s28 = int_to_ptr.vmem [resolvable:$true] %s216_s28 }
  0x58   : > { %v178_v3 = vshrl.u32 %v177_v0, 7  ;;  %v180_v4 = vand.u32 127, %v177_v0  ;;  %s685_s7 = scalar_lea.hbm %s730_s3, %s307_s30  ;;  %s203_s8 = scalar_lea.sflag [#allocation6], %s666_s26 }
  0x59   : > { %s426_s9 = scalar_lea.vmem %s680_s28, 128  ;;  %s501_s0 = smov [#allocation9]  }
  0x5a   : > { %v183_v5 = vadd.s32 %v182_v2, %v178_v3  ;;  %p427_p6 = scmp.ne.s32.totalorder %s680_s28, %s426_s9  ;;  %s430_s10 = sshll.u32 %s501_s0, 4  ;;  %s431_s10 = int_to_ptr.vmem [resolvable:$false] %s430_s10 }
  0x5b   : > { %s432_s11 = scalar_lea.vmem %s431_s10, 256  ;;  %p433_p13 = scmp.lt.s32.totalorder %s680_s28, %s431_s10 }
  0x5c   : > { %v184_v6 = vmul.u32 128, %v183_v5  ;;  %s187_s23 = smul.u32 2654435769, %s186_s21  ;;  %p428_p9 = pnand %p427_p6, %p617_p8 }
  0x5d   : > { %p434_p0 = scmp.lt.s32.totalorder %s432_s11, %s426_s9 }
  0x5e   : > { %v185_v7 = vadd.s32 %v184_v6, %v180_v4  ;;  %v188_v8 = vstv %s187_s23  ;;  %p429_p12 = pneg %p428_p9 }
  0x5f   : > { %p435_p5 = por %p434_p0, %p433_p13 }
  0x60   : > { %v189_v9 = vadd.s32 %v188_v8, %v185_v7 }
  0x61   : > { %p436_p10 = pnand %p435_p5, %p429_p12 }
  0x62   : > { %v190_v10 = vshrl.u32 %v189_v9, 16 }
  0x64   : > { %v191_v11 = vxor.u32 %v190_v10, %v189_v9 }
  0x66   : > { %v192_v12 = vmul.u32 2146121005, %v191_v11 }
  0x68   : > { %v193_v13 = vshrl.u32 %v192_v12, 15 }
  0x6a   : > { %v194_v14 = vxor.u32 %v193_v13, %v192_v12 }
  0x6c   : > { %v195_v15 = vmul.u32 2221713035, %v194_v14 }
  0x6e   : > { %v196_v18 = vshrl.u32 %v195_v15, 16 }
  0x70   : > { %v197_v20 = vxor.u32 %v196_v18, %v195_v15 }
  0x72   : > { %vm198_vm0 = vcmp.ge.u32.totalorder %v197_v20, 858993459 }
  0x73   : > { %v199_v22 = vsel %vm198_vm0, 1.25, %v500_v21 }
  0x74   : > { %v200_v23 = vmul.f32 %v199_v22, %v176_v19 }
  0x76   : > { %201 = vst [vmem:[%s173_s19] sm:$0xff] %v200_v23 }
  0x77   : > { %439 = shalt.err (!%p436_p10)
}
  0x78   : > { %s440_s18 = scalar_lea.hbm %s685_s7, 128  ;;  %s444_s26 = scalar_lea.hbm %s730_s3, 256 }
  0x79   : > { %p441_p1 = scmp.ne.s32.totalorder %s685_s7, %s440_s18  ;;  %p445_p3 = scmp.lt.u32.totalorder %s685_s7, %s730_s3 }
  0x7a   : > { %p446_p4 = scmp.lt.u32.totalorder %s444_s26, %s440_s18  ;;  %p448_p6 = scmp.lt.u32.totalorder %s440_s18, %s685_s7 }
  0x7b   : > { %p442_p2 = pnand %p441_p1, %p617_p8 }
  0x7c   : > { %p447_p11 = por %p446_p4, %p445_p3 }
  0x7d   : > { %p443_p7 = pneg %p442_p2 }
  0x7e   : > { %p449_p9 = por %p448_p6, %p447_p11 }
  0x80   : > { %p450_p12 = pnand %p449_p9, %p443_p7 }
  0x82   : > { %453 = shalt.err (!%p450_p12)
}
  0x83   : > { %316 = dma.vmem_to_hbm [thread:$0]  (%p617_p8), %s680_s28, 128, %s685_s7, %s203_s8  }
  0x84 PF: > { %s228_s5 = sand.u32 1, %s484_s14   ;;  %p749_p13 = scmp.ne.s32.totalorder %s735_s20, 0 }
  0x85   : > { %p750_p0 = scmp.ge.s32.totalorder %s496_s17, 2  ;;  %s229_s21 = scalar_lea.sflag [#allocation6], %s228_s5 }
  0x87   : > { %p327_p5 = pnand %p750_p0, %p749_p13 }
  0x89   : > { %479 = dma.done.wait (!%p327_p5), %s229_s21, 128  }
  0x8a   : > { %481 = vsyncadd (!%p327_p5), %s229_s21, 4294967168  ;;  %p18_p10 = scmp.ge.s32.totalorder %s573_s24, 4   ;;  %s751_s14 = smov %s488_s15 }
  0x8b   : > { %s752_s15 = smov %s492_s16  ;;  %s753_s16 = smov %s609_s12 }
  0x8c   : > { %s754_s17 = smov %s573_s24  ;;  %20 = sbr.rel (!%p18_p10) target bundleno = 8 (0x8), region = 77 }
  0x93   :  { %234 = vsyncpa [#allocation5], 1 }
  0x94   :  { %236 = vsyncpa [#allocation5 + $0x1], 1 }
  0x95   :  { %237 = vsyncpa [#allocation8], 1 }
  0x96   :  { %238 = vsyncpa [#allocation6], 1 }
  0x97   :  { %240 = vsyncpa [#allocation6 + $0x1], 1 }

</bundles_post_ra>
